<compile_context>
chip_gen: v5e
topology: v5e:2x2
jax: 0.10.0
libtpu: 0.0.40
codegen_flags: <defaults>
</compile_context>

<pallas_src>
import functools

import jax
import jax.numpy as jnp
from jax.experimental import pallas as pl
from jax.experimental.pallas import tpu as pltpu


def _swish_kernel(x_ref, o_ref, *, compute_dtype):
    x = x_ref[...].astype(compute_dtype)
    o_ref[...] = (x * jax.nn.sigmoid(x)).astype(o_ref.dtype)


# Widest lane count that divides the flat size wins: wider last dim -> denser,
# unmasked vector stores (biggest single lever for elementwise kernels).
_LANE_CANDIDATES = (1024, 512, 256, 128)

# Slabs at or below this take the serial single-block path; everything bigger
# is forced to >= 4 grid steps so DMAs overlap compute.
_SMALL_SLAB_BYTES = 512 * 1024


def _sublane_multiple(dtype) -> int:
    # Native sublane packing per dtype width: f32 -> 8, bf16 -> 16, int8/fp8 -> 32.
    return {4: 8, 2: 16, 1: 32}.get(jnp.dtype(dtype).itemsize, 8)


def _compute_dtype(dtype):
    d = jnp.dtype(dtype)
    if d == jnp.dtype(jnp.float32) or d == jnp.dtype(jnp.bfloat16):
        return d  # bf16 stays bf16 (native on v6e/v7x; Mosaic upcasts on v5e)
    return jnp.dtype(jnp.float32)  # fp16 / fp8 / int: compute in f32


@functools.lru_cache(maxsize=None)
def _chip_budget():
    """(target_block_bytes, vmem_limit_bytes, dual_core_split) for this chip."""
    try:
        vmem = int(pltpu.get_tpu_info().vmem_capacity_bytes)
    except Exception:
        vmem = 0
    if vmem and vmem <= 64 * 1024 * 1024:
        # v7x-class: 64 MiB VMEM per TC, ~3.2 TB/s HBM, 2 TCs/chip.
        return 4 * 1024 * 1024, 32 * 1024 * 1024, True
    if vmem >= 128 * 1024 * 1024:
        # v5e / v6e: 128 MiB VMEM, single TC; 8 MiB blocks -> 32 MiB live.
        return 8 * 1024 * 1024, 64 * 1024 * 1024, False
    # Unknown chip: conservative budget that fits every generation.
    return 4 * 1024 * 1024, 32 * 1024 * 1024, False


def _swish_2d(x2d: jax.Array, *, donate: bool = False) -> jax.Array:
    """Run the swish kernel over a 2-D (rows, lanes) slab, lanes % 128 == 0."""
    rows, lanes = x2d.shape
    dtype = x2d.dtype
    itemsize = jnp.dtype(dtype).itemsize
    sub = _sublane_multiple(dtype)
    target_block_bytes, vmem_limit, dual_core = _chip_budget()

    slab_bytes = rows * lanes * itemsize
    if slab_bytes <= _SMALL_SLAB_BYTES or rows < 4 * sub:
        # Tiny slab: one full-extent block (exempt from the (8,128) rule).
        block_rows = rows
        grid_steps = 1
    else:
        # Rows per block: aim for ~target_block_bytes, aligned to the dtype's
        # sublane packing, but never fewer than 4 grid steps so the pipeline
        # actually overlaps (and both TCs get work when the grid is core-split).
        want = max(sub, (target_block_bytes // (lanes * itemsize)) // sub * sub)
        cap = max(sub, (rows // 4) // sub * sub)
        block_rows = min(want, cap)
        grid_steps = pl.cdiv(rows, block_rows)  # partial last block: Pallas masks it

    if dual_core and grid_steps > 1:
        semantics = (pltpu.CORE_PARALLEL,)  # split the stream across both v7x TCs
    else:
        semantics = ("parallel",)

    n = rows * lanes
    cost = pl.CostEstimate(
        flops=4 * n,
        transcendentals=n,
        bytes_accessed=2 * n * itemsize,
    )

    kernel = functools.partial(_swish_kernel, compute_dtype=_compute_dtype(dtype))

    return pl.pallas_call(
        kernel,
        out_shape=jax.ShapeDtypeStruct((rows, lanes), dtype),
        grid=(grid_steps,),
        in_specs=[pl.BlockSpec((block_rows, lanes), lambda i: (i, 0))],
        out_specs=pl.BlockSpec((block_rows, lanes), lambda i: (i, 0)),
        compiler_params=pltpu.CompilerParams(
            dimension_semantics=semantics,
            vmem_limit_bytes=vmem_limit,
        ),
        cost_estimate=cost,
        input_output_aliases=({0: 0} if donate else {}),
    )(x2d)


def swish(x: jax.Array, *, donate: bool = False) -> jax.Array:
    """Elementwise swish matching torch's `x * torch.sigmoid(x)` on any shape."""
    orig_shape = x.shape
    n = x.size
    if n == 0:
        return x
    if x.dtype == jnp.dtype("float64"):
        # TPU has no f64 vector path; plain XLA avoids a silent downcast.
        return x * jax.nn.sigmoid(x)

    flat = jnp.ravel(x)  # contiguous reshape: metadata only, no HBM copy

    # Fast path: reshape in place to a lane-aligned 2-D slab (no padding copy,
    # no post-kernel slice).
    lanes = next((c for c in _LANE_CANDIDATES if n % c == 0), None)
    if lanes is not None:
        y2d = _swish_2d(flat.reshape(n // lanes, lanes), donate=donate)
        return y2d.reshape(orig_shape)

    # Ragged fallback (n not a multiple of 128): kernel on the 128-aligned
    # prefix, plain jnp on the < 128 element tail.  No pad / slice copies.
    n_main = (n // 128) * 128
    tail = flat[n_main:]
    tail_out = tail * jax.nn.sigmoid(tail)
    if n_main == 0:
        return tail_out.reshape(orig_shape)
    lanes = next(c for c in _LANE_CANDIDATES if n_main % c == 0)
    y_main = _swish_2d(flat[:n_main].reshape(n_main // lanes, lanes))
    # TODO(synk): for very large ragged tensors, fold the tail into the kernel
    # (scalar-prefetched length + masked pltpu.store) to avoid this concat copy.
    return jnp.concatenate([y_main.reshape(-1), tail_out]).reshape(orig_shape)


if __name__ == "__main__":
    key = jax.random.PRNGKey(0)

    # Primary check: NCHW input as the PyTorch module implies (small slab path).
    x = jax.random.normal(key, (2, 4, 16, 16), dtype=jnp.float32)
    y = swish(x)
    jax.block_until_ready(y)
    y_ref = x * jax.nn.sigmoid(x)
    assert y.shape == x.shape and y.dtype == x.dtype
    assert jnp.max(jnp.abs(y - y_ref)) < 1e-6

    # Mid-size check: ~1 MiB slab exercises the multi-step pipelined grid path.
    x1 = jax.random.normal(jax.random.PRNGKey(2), (4, 16, 64, 64), dtype=jnp.float32)
    y1 = swish(x1)
    jax.block_until_ready(y1)
    y1_ref = x1 * jax.nn.sigmoid(x1)
    assert y1.shape == x1.shape and jnp.max(jnp.abs(y1 - y1_ref)) < 1e-6

    # Ragged check: exercises the prefix/tail fallback (no pad, no slice copy).
    x2 = jax.random.normal(jax.random.PRNGKey(1), (3, 5, 7), dtype=jnp.float32)
    y2 = swish(x2)
    jax.block_until_ready(y2)
    y2_ref = x2 * jax.nn.sigmoid(x2)
    assert y2.shape == x2.shape and jnp.max(jnp.abs(y2 - y2_ref)) < 1e-6

    print("KERNEL_OK")
</pallas_src>

<mosaic_0001>
module attributes {stable_mosaic.version = 11 : i64} {
  func.func @_swish_kernel(%arg0: i32, %arg1: memref<2x1024xf32, #tpu.memory_space<vmem>>, %arg2: memref<2x1024xf32, #tpu.memory_space<vmem>>) attributes {dimension_semantics = [#tpu.dimension_semantics<parallel>], iteration_bounds = array<i64: 1>, scalar_prefetch = 0 : i64, scratch_operands = 0 : i64, tpu.core_type = #tpu.core_type<tc>, window_params = [{transform_indices = @transform_0, window_bounds = array<i64: 2, 1024>}, {transform_indices = @transform_1, window_bounds = array<i64: 2, 1024>}]} {
    %c0 = arith.constant 0 : index
    %c0_0 = arith.constant 0 : index
    %0 = vector.load %arg1[%c0, %c0_0] : memref<2x1024xf32, #tpu.memory_space<vmem>>, vector<2x1024xf32>
    %1 = arith.negf %0 : vector<2x1024xf32>
    %2 = math.exp %1 : vector<2x1024xf32>
    %cst = arith.constant 1.000000e+00 : f32
    %3 = vector.broadcast %cst : f32 to vector<2x1024xf32>
    %4 = arith.addf %3, %2 : vector<2x1024xf32>
    %5 = arith.divf %3, %4 : vector<2x1024xf32>
    %6 = arith.mulf %0, %5 : vector<2x1024xf32>
    %c0_1 = arith.constant 0 : index
    %c0_2 = arith.constant 0 : index
    %7 = vector.load %arg2[%c0_1, %c0_2] : memref<2x1024xf32, #tpu.memory_space<vmem>>, vector<2x1024xf32>
    tpu.vector_store %arg2[%c0_1, %c0_2], %6 {strides = array<i32>} : memref<2x1024xf32, #tpu.memory_space<vmem>>, vector<2x1024xf32>,
    return
  }
  func.func @transform_0(%arg0: i32) -> (i32, i32) {
    %c0_i32 = arith.constant 0 : i32
    %c0_i32_0 = arith.constant 0 : i32
    return %arg0, %c0_i32 : i32, i32
  }
  func.func @transform_1(%arg0: i32) -> (i32, i32) {
    %c0_i32 = arith.constant 0 : i32
    %c0_i32_0 = arith.constant 0 : i32
    return %arg0, %c0_i32 : i32, i32
  }
}

</mosaic_0001>

<bundles_post_ra>
// kernel: tpu_custom_call.1
= control target key start
LH: loop header
LB: loop body
LE: loop exit
PB: predicated region body
PF: predicated region fallthrough
CT: control target
= control target key end

     0   :  { %6 = vsyncpa [#allocation3], 0  ;;  %s166_s0 = inlined_call_operand.hbm [shape: f32[2,1024], index: 0, kind: input, shape index: {}]   ;;  %s167_s1 = inlined_call_operand.hbm [shape: f32[2,1024], index: 1, kind: output, shape index: {}]  }
   0x1   :  { %7 = vsyncpa [#allocation4], 0  ;;  %s13_s8 = sshll.u32 %s166_s0, 4  ;;  %s148_s9 = smov [#allocation2]   ;;  %s14_s8 = int_to_ptr.hbm [resolvable:$true] %s13_s8 }
   0x2   :  { %s15_s10 = sshll.u32 %s148_s9, 4  ;;  %s16_s10 = int_to_ptr.vmem [resolvable:$true] %s15_s10 }
   0x3   :  { %18 = dma.hbm_to_vmem [thread:$0]  %s14_s8, 256, %s16_s10, [#allocation3]  }
   0x4   :  { %144 = dma.done.wait [#allocation3], 256  }
   0x5   :  { %145 = vsyncadd [#allocation3], 4294967040  ;;  %v23_v0 = vld [vmem:[#allocation2] sm:$0xff]  ;;  %v24_v1 = vld [vmem:[#allocation2 + $0x8] sm:$0xff]  ;;  %s149_s0 = smov [#allocation5]   ;;  %s74_s14 = sshll.u32 %s167_s1, 4  ;;  %s75_s14 = int_to_ptr.hbm [resolvable:$true] %s74_s14 }
   0x6   :  { %v84_v2 = vmul.f32 -1.442695, %v23_v0  ;;  %v85_v3 = vmul.f32 -1.442695, %v24_v1  ;;  %s72_s11 = sshll.u32 %s149_s0, 4  ;;  %s73_s11 = int_to_ptr.vmem [resolvable:$true] %s72_s11 }
   0x8   :  { %88 = vpow2.f32 %v84_v2 }
   0x9   :  { %90 = vpow2.f32 %v85_v3 }
   0xe   :  { %v89_v4 = vpop.eup %88 }
   0xf   :  { %v91_v5 = vpop.eup %90  ;;  %v31_v6 = vadd.f32 1.0, %v89_v4 }
  0x10   :  { %v32_v7 = vadd.f32 1.0, %v91_v5 }
  0x11   :  { %92 = vrcp.f32 %v31_v6  ;;  %vm38_vm0 = vweird.f32 %v31_v6  ;;  %v44_v11 = vand.u32 2147483648, %v31_v6  ;;  %v42_v14 = vand.u32 2147483647, %v31_v6 }
  0x12   :  { %94 = vrcp.f32 %v32_v7  ;;  %v59_v15 = vand.u32 2147483648, %v32_v7  ;;  %vm53_vm2 = vweird.f32 %v32_v7  ;;  %v57_v17 = vand.u32 2147483647, %v32_v7 }
  0x13   :  { %v45_v19 = vor.u32 1.1754944e-38, %v44_v11  ;;  %vm43_vm5 = vcmp.eq.f32.partialorder %v42_v14, 8.507059e+37 }
  0x14   :  { %v60_v22 = vor.u32 1.1754944e-38, %v59_v15  ;;  %vm58_vm7 = vcmp.eq.f32.partialorder %v57_v17, 8.507059e+37 }
  0x17   :  { %v93_v8 = vpop.eup %92 }
  0x18   :  { %v95_v9 = vpop.eup %94  ;;  %v34_v10 = vmul.f32 %v93_v8, %v31_v6  ;;  %vm39_vm1 = vweird.f32 %v93_v8 }
  0x19   :  { %v49_v12 = vmul.f32 %v95_v9, %v32_v7  ;;  %vm54_vm3 = vweird.f32 %v95_v9  ;;  %vm40_vm4 = vmor %vm38_vm0, %vm39_vm1 }
  0x1a   :  { %v35_v13 = vsub.f32 1.0, %v34_v10  ;;  %vm55_vm6 = vmor %vm53_vm2, %vm54_vm3 }
  0x1b   :  { %v50_v16 = vsub.f32 1.0, %v49_v12 }
  0x1c   :  { %v36_v18 = vmul.f32 %v93_v8, %v35_v13 }
  0x1d   :  { %v51_v20 = vmul.f32 %v95_v9, %v50_v16 }
  0x1e   :  { %v37_v21 = vadd.f32 %v93_v8, %v36_v18 }
  0x1f   :  { %v52_v23 = vadd.f32 %v95_v9, %v51_v20 }
  0x20   :  { %v41_v24 = vsel %vm40_vm4, %v93_v8, %v37_v21 }
  0x21   :  { %v46_v25 = vsel %vm43_vm5, %v45_v19, %v41_v24  ;;  %v56_v26 = vsel %vm55_vm6, %v95_v9, %v52_v23 }
  0x22   :  { %v63_v27 = vmul.f32 %v46_v25, %v23_v0  ;;  %v61_v28 = vsel %vm58_vm7, %v60_v22, %v56_v26 }
  0x23   :  { %v64_v29 = vmul.f32 %v61_v28, %v24_v1 }
  0x24   :  { %65 = vst [vmem:[#allocation5] sm:$0xff] %v63_v27 }
  0x25   :  { %66 = vst [vmem:[#allocation5 + $0x8] sm:$0xff] %v64_v29 }
  0x26   :  { %77 = dma.vmem_to_hbm [thread:$0]  %s73_s11, 256, %s75_s14, [#allocation4]  }
  0x27   :  { %146 = dma.done.wait [#allocation4], 256  }
  0x28   :  { %147 = vsyncadd [#allocation4], 4294967040 }
  0x29   :  { %82 = vsyncpa [#allocation3], 1 }
  0x2a   :  { %83 = vsyncpa [#allocation4], 1 }

</bundles_post_ra>
